<compile_context>
chip_gen: v7x
topology: tpu7x:2x2x1
jax: 0.10.0
libtpu: 0.0.40
codegen_flags: <defaults>
</compile_context>

<pallas_src>
import functools

import jax
import jax.numpy as jnp
from jax import lax
from jax.experimental import pallas as pl
from jax.experimental.pallas import tpu as pltpu


def _token_ce_kernel(x_ref, t_ref, out_ref, *, tile_rows, n_valid_rows,
                     needs_mask):
    """One (row-tile j, repeat i) grid step: add its partial CE sum into out_ref."""
    j = pl.program_id(0)   # row-tile index within the target
    i = pl.program_id(1)   # repeat index (which x slab uses this target block)

    @pl.when((j == 0) & (i == 0))
    def _init():
        out_ref[...] = jnp.zeros_like(out_ref)

    x = x_ref[0]           # (tn, C) native dtype
    t = t_ref[...]         # (tn, C) native dtype

    # Stable log-softmax pieces; row_loss = (m + lse) * sum(t) - sum(t * x).
    xf = x.astype(jnp.float32)
    m = jnp.max(xf, axis=-1, keepdims=True)                            # (tn, 1)
    lse = jnp.log(jnp.sum(jnp.exp(xf - m), axis=-1, keepdims=True))    # (tn, 1)
    t_sum = jnp.sum(t, axis=-1, keepdims=True, dtype=jnp.float32)      # (tn, 1)
    tx_sum = jnp.sum(t.astype(jnp.float32) * xf, axis=-1, keepdims=True)
    row_loss = (m + lse) * t_sum - tx_sum                              # (tn, 1)

    if needs_mask:
        # Ragged last row-tile: rows >= n_valid_rows hold garbage (may be
        # NaN/Inf) -> select-zero them before the reduction.
        row0 = j * tile_rows
        row_ids = row0 + lax.broadcasted_iota(jnp.int32, row_loss.shape, 0)
        row_loss = jnp.where(row_ids < n_valid_rows, row_loss, 0.0)

    out_ref[...] += jnp.sum(row_loss, keepdims=True)                   # (1, 1)


def _default_vmem_limit_bytes():
    """Per-generation scoped-VMEM limit: ~48 MiB on v7x, ~96 MiB on v5e/v6e."""
    try:
        phys = int(pltpu.get_tpu_info().vmem_capacity_bytes)
    except Exception:
        phys = 64 * 1024 * 1024   # assume the most restrictive (v7x per-TC)
    return max(32 * 1024 * 1024, min((phys * 3) // 4, 96 * 1024 * 1024))


def token_label_soft_target_cross_entropy(x, target, *, max_tile_rows=8192,
                                          vmem_limit_bytes=None):
    """JAX wrapper reproducing TokenLabelSoftTargetCrossEntropy.forward."""
    assert x.ndim == 2, x.shape
    n_rep, C = x.shape

    # Token-labeling targets stored as (N, C, 2) -> take the soft channel.
    # (Done before the repeat; torch itself errors on the 3D + repeat combo.)
    if target.ndim == 3 and target.shape[-1] == 2:
        target = target[:, :, 1]
    assert target.ndim == 2 and target.shape[1] == C, target.shape

    n_t = target.shape[0]
    assert n_rep % n_t == 0 and n_rep >= n_t, (n_rep, n_t)
    k = n_rep // n_t
    x3 = x.reshape(k, n_t, C)   # free row-major view; folds the repeat into the grid

    if vmem_limit_bytes is None:
        vmem_limit_bytes = _default_vmem_limit_bytes()

    x_item = jnp.dtype(x.dtype).itemsize
    t_item = jnp.dtype(target.dtype).itemsize
    # Sublane packing: 8 rows/vreg for 4-byte dtypes, 16 for 2-byte, 32 for 1-byte.
    row_align = max(8, 32 // max(1, min(x_item, t_item)))

    # Per-row VMEM bytes: two pipeline buffers per input in native dtype plus
    # ~3 full-width f32 temporaries inside the kernel (upcast x, exp operand,
    # t*x product).
    per_row_bytes = C * (2 * (x_item + t_item) + 3 * 4)
    budget = max(int(vmem_limit_bytes) - 8 * 1024 * 1024, 4 * 1024 * 1024)
    cap = min(max_tile_rows, max(row_align, budget // per_row_bytes))
    # TODO(synk): for very large C (>= ~16-32K classes) add a C-axis grid
    # dimension with online max/lse accumulation instead of shrinking tn.

    if n_t <= cap:
        tn = n_t                # block equals the full row extent: no mask
        needs_mask = False
    else:
        tn = max(row_align, (cap // row_align) * row_align)
        needs_mask = (n_t % tn) != 0
    n_jb = pl.cdiv(n_t, tn)

    kernel = functools.partial(_token_ce_kernel, tile_rows=tn,
                               n_valid_rows=n_t, needs_mask=needs_mask)

    # Grid (row-tile, repeat): the repeat axis is innermost so the target block
    # index is constant across it, and the resident (1,1) accumulator output is
    # written back to HBM exactly once.
    loss_sum = pl.pallas_call(
        kernel,
        out_shape=jax.ShapeDtypeStruct((1, 1), jnp.float32),
        grid=(n_jb, k),
        in_specs=[
            pl.BlockSpec((1, tn, C), lambda j, i: (i, j, 0)),
            pl.BlockSpec((tn, C), lambda j, i: (j, 0)),
        ],
        out_specs=pl.BlockSpec((1, 1), lambda j, i: (0, 0)),
        compiler_params=pltpu.CompilerParams(
            dimension_semantics=("arbitrary", "arbitrary"),
            vmem_limit_bytes=int(vmem_limit_bytes),
        ),
    )(x3, target)

    # Mean over the real rows (padded rows contributed 0).  Return float32.
    return loss_sum[0, 0] / jnp.float32(n_rep)


def _reference(x, target):
    """Pure-JAX reference mirroring the PyTorch forward (for checking)."""
    n_rep = x.shape[0]
    n = target.shape[0]
    if n != n_rep:
        target = jnp.tile(target, (n_rep // n, 1))
    if target.ndim == 3 and target.shape[-1] == 2:
        target = target[:, :, 1]
    logp = jax.nn.log_softmax(x.astype(jnp.float32), axis=-1)
    return jnp.mean(jnp.sum(-target.astype(jnp.float32) * logp, axis=-1))


if __name__ == "__main__":
    key = jax.random.PRNGKey(0)
    k1, k2, k3, k4, k5, k6 = jax.random.split(key, 6)
    C = 32

    # Demo A: token-labeling target stored as (N, C, 2); soft channel [:, :, 1].
    N = 16
    x_a = jax.random.normal(k1, (N, C), dtype=jnp.float32)
    raw = jax.random.uniform(k2, (N, C, 2), dtype=jnp.float32)
    soft = raw[:, :, 1] / jnp.sum(raw[:, :, 1], axis=-1, keepdims=True)
    t_a = raw.at[:, :, 1].set(soft)
    loss_a = jax.block_until_ready(token_label_soft_target_cross_entropy(x_a, t_a))
    ref_a = _reference(x_a, t_a)
    assert jnp.allclose(loss_a, ref_a, rtol=1e-5, atol=1e-5), (loss_a, ref_a)

    # Demo B: target repeat along batch (x has 2x rows); repeat folded into grid.
    x_b = jax.random.normal(k3, (16, C), dtype=jnp.float32)
    t_b = jax.nn.softmax(jax.random.normal(k4, (8, C), dtype=jnp.float32), axis=-1)
    loss_b = jax.block_until_ready(token_label_soft_target_cross_entropy(x_b, t_b))
    ref_b = _reference(x_b, t_b)
    assert jnp.allclose(loss_b, ref_b, rtol=1e-5, atol=1e-5), (loss_b, ref_b)

    # Demo C: ragged rows vs tile -> cdiv grid + row masking.
    x_c = jax.random.normal(k5, (12, C), dtype=jnp.float32)
    t_c = jax.nn.softmax(jax.random.normal(k2, (12, C), dtype=jnp.float32), axis=-1)
    loss_c = jax.block_until_ready(
        token_label_soft_target_cross_entropy(x_c, t_c, max_tile_rows=8))
    ref_c = _reference(x_c, t_c)
    assert jnp.allclose(loss_c, ref_c, rtol=1e-5, atol=1e-5), (loss_c, ref_c)

    # Demo D: repeat AND ragged row tiles together (2D grid, mask on j axis).
    x_d = jax.random.normal(k6, (24, C), dtype=jnp.float32)
    t_d = jax.nn.softmax(jax.random.normal(k1, (12, C), dtype=jnp.float32), axis=-1)
    loss_d = jax.block_until_ready(
        token_label_soft_target_cross_entropy(x_d, t_d, max_tile_rows=8))
    ref_d = _reference(x_d, t_d)
    assert jnp.allclose(loss_d, ref_d, rtol=1e-5, atol=1e-5), (loss_d, ref_d)

    # Demo E: bf16 inputs streamed in native dtype (f32 math inside the kernel).
    x_e = jax.random.normal(k4, (16, C), dtype=jnp.float32).astype(jnp.bfloat16)
    t_e = jax.nn.softmax(jax.random.normal(k3, (16, C), dtype=jnp.float32),
                         axis=-1).astype(jnp.bfloat16)
    loss_e = jax.block_until_ready(token_label_soft_target_cross_entropy(x_e, t_e))
    ref_e = _reference(x_e, t_e)
    assert jnp.allclose(loss_e, ref_e, rtol=1e-3, atol=1e-3), (loss_e, ref_e)

    print("KERNEL_OK")
</pallas_src>

<mosaic_0001>
module attributes {stable_mosaic.version = 11 : i64} {
  func.func @_token_ce_kernel(%arg0: i32, %arg1: i32, %arg2: memref<1x16x32xf32, #tpu.memory_space<vmem>>, %arg3: memref<16x32xf32, #tpu.memory_space<vmem>>, %arg4: memref<1x1xf32, #tpu.memory_space<vmem>>) attributes {dimension_semantics = [#tpu.dimension_semantics<arbitrary>, #tpu.dimension_semantics<arbitrary>], iteration_bounds = array<i64: 1, 1>, scalar_prefetch = 0 : i64, scratch_operands = 0 : i64, tpu.core_type = #tpu.core_type<tc>, window_params = [{transform_indices = @transform_0, window_bounds = array<i64: 1, 16, 32>}, {transform_indices = @transform_1, window_bounds = array<i64: 16, 32>}, {pipeline_mode = #tpu.pipeline_mode<synchronous>, transform_indices = @transform_2, window_bounds = array<i64: 1, 1>}]} {
    %c0_i32 = arith.constant 0 : i32
    %0 = arith.cmpi eq, %arg0, %c0_i32 : i32
    %c0_i32_0 = arith.constant 0 : i32
    %1 = arith.cmpi eq, %arg1, %c0_i32_0 : i32
    %2 = arith.andi %0, %1 : i1
    %3 = arith.extui %2 : i1 to i32
    %c0_i32_1 = arith.constant 0 : i32
    %4 = arith.cmpi ne, %3, %c0_i32_1 : i32
    scf.if %4 {
      %cst_14 = arith.constant 0.000000e+00 : f32
      %32 = vector.broadcast %cst_14 : f32 to vector<1x1xf32>
      %c0_15 = arith.constant 0 : index
      %c0_16 = arith.constant 0 : index
      %33 = vector.load %arg4[%c0_15, %c0_16] : memref<1x1xf32, #tpu.memory_space<vmem>>, vector<1x1xf32>
      tpu.vector_store %arg4[%c0_15, %c0_16], %32 {strides = array<i32>} : memref<1x1xf32, #tpu.memory_space<vmem>>, vector<1x1xf32>,
    } else {
    }
    %c0 = arith.constant 0 : index
    %c0_2 = arith.constant 0 : index
    %c0_3 = arith.constant 0 : index
    %5 = vector.load %arg2[%c0, %c0_2, %c0_3] : memref<1x16x32xf32, #tpu.memory_space<vmem>>, vector<1x16x32xf32>
    %6 = vector.shape_cast %5 : vector<1x16x32xf32> to vector<16x32xf32>
    %c0_4 = arith.constant 0 : index
    %c0_5 = arith.constant 0 : index
    %7 = vector.load %arg3[%c0_4, %c0_5] : memref<16x32xf32, #tpu.memory_space<vmem>>, vector<16x32xf32>
    %cst = arith.constant dense<0xFF800000> : vector<16xf32>
    %8 = vector.multi_reduction <maximumf>, %6, %cst [1] : vector<16x32xf32> to vector<16xf32>
    %9 = vector.shape_cast %8 : vector<16xf32> to vector<16x1xf32>
    %10 = vector.broadcast %9 : vector<16x1xf32> to vector<16x32xf32>
    %11 = arith.subf %6, %10 : vector<16x32xf32>
    %12 = math.exp %11 : vector<16x32xf32>
    %cst_6 = arith.constant dense<0.000000e+00> : vector<16xf32>
    %13 = vector.multi_reduction <add>, %12, %cst_6 [1] : vector<16x32xf32> to vector<16xf32>
    %14 = vector.shape_cast %13 : vector<16xf32> to vector<16x1xf32>
    %15 = math.log %14 : vector<16x1xf32>
    %cst_7 = arith.constant dense<0.000000e+00> : vector<16xf32>
    %16 = vector.multi_reduction <add>, %7, %cst_7 [1] : vector<16x32xf32> to vector<16xf32>
    %17 = vector.shape_cast %16 : vector<16xf32> to vector<16x1xf32>
    %18 = arith.mulf %7, %6 : vector<16x32xf32>
    %cst_8 = arith.constant dense<0.000000e+00> : vector<16xf32>
    %19 = vector.multi_reduction <add>, %18, %cst_8 [1] : vector<16x32xf32> to vector<16xf32>
    %20 = vector.shape_cast %19 : vector<16xf32> to vector<16x1xf32>
    %21 = arith.addf %9, %15 : vector<16x1xf32>
    %22 = arith.mulf %21, %17 : vector<16x1xf32>
    %23 = arith.subf %22, %20 : vector<16x1xf32>
    %c0_9 = arith.constant 0 : index
    %c0_10 = arith.constant 0 : index
    %24 = vector.load %arg4[%c0_9, %c0_10] : memref<1x1xf32, #tpu.memory_space<vmem>>, vector<1x1xf32>
    %25 = vector.shape_cast %23 : vector<16x1xf32> to vector<1x16x1xf32>
    %cst_11 = arith.constant dense<0.000000e+00> : vector<1xf32>
    %26 = vector.multi_reduction <add>, %25, %cst_11 [1, 2] : vector<1x16x1xf32> to vector<1xf32>
    %27 = vector.shape_cast %26 : vector<1xf32> to vector<1x1x1xf32>
    %28 = vector.extract %27[0, 0, 0] : f32 from vector<1x1x1xf32>
    %29 = vector.broadcast %28 : f32 to vector<1x1xf32>
    %30 = arith.addf %24, %29 : vector<1x1xf32>
    %c0_12 = arith.constant 0 : index
    %c0_13 = arith.constant 0 : index
    %31 = vector.load %arg4[%c0_12, %c0_13] : memref<1x1xf32, #tpu.memory_space<vmem>>, vector<1x1xf32>
    tpu.vector_store %arg4[%c0_12, %c0_13], %30 {strides = array<i32>} : memref<1x1xf32, #tpu.memory_space<vmem>>, vector<1x1xf32>,
    return
  }
  func.func @transform_0(%arg0: i32, %arg1: i32) -> (i32, i32, i32) {
    %c0_i32 = arith.constant 0 : i32
    %c0_i32_0 = arith.constant 0 : i32
    return %arg1, %arg0, %c0_i32 : i32, i32, i32
  }
  func.func @transform_1(%arg0: i32, %arg1: i32) -> (i32, i32) {
    %c0_i32 = arith.constant 0 : i32
    %c0_i32_0 = arith.constant 0 : i32
    return %arg0, %c0_i32 : i32, i32
  }
  func.func @transform_2(%arg0: i32, %arg1: i32) -> (i32, i32) {
    %c0_i32 = arith.constant 0 : i32
    %c0_i32_0 = arith.constant 0 : i32
    %c0_i32_1 = arith.constant 0 : i32
    return %c0_i32, %c0_i32_0 : i32, i32
  }
}

</mosaic_0001>

<bundles_post_ra>
// kernel: tpu_custom_call.1
= control target key start
LH: loop header
LB: loop body
LE: loop exit
PB: predicated region body
PF: predicated region fallthrough
CT: control target
= control target key end

     0   :  { %7 = vsyncpa [#allocation3], 0  ;;  %s284_s0 = inlined_call_operand.hbm [shape: f32[1,16,32], index: 0, kind: input, shape index: {}]   ;;  %s285_s1 = inlined_call_operand.hbm [shape: f32[16,32], index: 1, kind: input, shape index: {}]   ;;  %s286_s2 = inlined_call_operand.hbm [shape: f32[1,1], index: 2, kind: output, shape index: {}]  }
   0x1   :  { %8 = vsyncpa [#allocation6], 0 }
   0x2   :  { %9 = vsyncpa [#allocation4], 0  ;;  %s217_s9 = smov [#allocation2]   ;;  %s145_s13 = scalar_lea.hbm %s284_s0, 256 }
   0x3   :  { %s15_s10 = sshll.u32 %s217_s9, 4  ;;  %p146_p0 = scmp.ne.s32.totalorder %s284_s0, %s145_s13  ;;  %s16_s10 = int_to_ptr.vmem [resolvable:$true] %s15_s10 }
   0x4   :  { %p149_p1 = scmp.lt.u32.totalorder %s145_s13, %s284_s0 }
   0x6   :  { %p151_p2 = pnand %p149_p1, %p146_p0 }
   0x8   :  { %154 = shalt.err (!%p151_p2)
}
   0x9   :  { %s155_s18 = scalar_lea.vmem %s16_s10, 256  ;;  %p160_p4 = scmp.lt.s32.totalorder %s16_s10, %s16_s10 }
   0xa   :  { %p156_p3 = scmp.ne.s32.totalorder %s16_s10, %s155_s18  ;;  %p161_p5 = scmp.lt.s32.totalorder %s155_s18, %s155_s18 }
   0xc   :  { %p162_p6 = por %p161_p5, %p160_p4 }
   0xe   :  { %p163_p7 = pnand %p162_p6, %p156_p3 }
  0x10   :  { %166 = shalt.err (!%p163_p7)
}
  0x11   :  { %s218_s19 = smov 128   ;;  %s219_s20 = smov 8  }
  0x12   :  { %21 = dma.hbm_to_vmem [thread:$0]  %s284_s0, 256, %s16_s10, [#allocation3], %s218_s19, %s218_s19, %s219_s20  }
  0x13   :  { %s220_s23 = smov [#allocation5]   ;;  %s167_s27 = scalar_lea.hbm %s285_s1, 256 }
  0x14   :  { %s27_s24 = sshll.u32 %s220_s23, 4  ;;  %p168_p8 = scmp.ne.s32.totalorder %s285_s1, %s167_s27  ;;  %s28_s24 = int_to_ptr.vmem [resolvable:$true] %s27_s24 }
  0x15   :  { %p171_p9 = scmp.lt.u32.totalorder %s167_s27, %s285_s1 }
  0x17   :  { %p173_p10 = pnand %p171_p9, %p168_p8 }
  0x19   :  { %176 = shalt.err (!%p173_p10)
}
  0x1a   :  { %s177_s4 = scalar_lea.vmem %s28_s24, 256  ;;  %p182_p12 = scmp.lt.s32.totalorder %s28_s24, %s28_s24 }
  0x1b   :  { %p178_p11 = scmp.ne.s32.totalorder %s28_s24, %s177_s4  ;;  %p183_p13 = scmp.lt.s32.totalorder %s177_s4, %s177_s4 }
  0x1d   :  { %p184_p0 = por %p183_p13, %p182_p12 }
  0x1f   :  { %p185_p1 = pnand %p184_p0, %p178_p11 }
  0x21   :  { %188 = shalt.err (!%p185_p1)
}
  0x22   :  { %33 = dma.hbm_to_vmem [thread:$0]  %s285_s1, 256, %s28_s24, [#allocation6], %s218_s19, %s218_s19, %s219_s20  }
  0x23   :  { %211 = dma.done.wait [#allocation3], 256  }
  0x24   :  { %212 = vsyncadd [#allocation3], 4294967040 }
  0x25   :  { %213 = dma.done.wait [#allocation6], 256  }
  0x26   :  { %214 = vsyncadd [#allocation6], 4294967040  ;;  %vm46_vm0 = vcmask 0   ;;  %v221_v0 = vmov 0.0   ;;  %vm52_vm1 = vcmask 261120   ;;  %v48_v1 = vld [vmem:[#allocation2] sm:$0xff] }
  0x27   :  { %47 = vst.msk [vmem:[#allocation7] sm:$0x1] %vm46_vm0, %v221_v0  ;;  %v49_v2 = vld [vmem:[#allocation2 + $0x8] sm:$0xff]  ;;  %v53_v3 = vsel %vm52_vm1, %v48_v1, -inf  ;;  %v50_v5 = vld [vmem:[#allocation5] sm:$0xff]  ;;  %v51_v18 = vld [vmem:[#allocation5 + $0x8] sm:$0xff] }
  0x28   :  { %54 = vmax.xlane.f32.xlu0 %v53_v3  ;;  %v56_v4 = vsel %vm52_vm1, %v49_v2, -inf  ;;  %v75_v6 = vsel %vm52_vm1, %v50_v5, 0.0  ;;  %v81_v7 = vmul.f32 %v50_v5, %v48_v1  ;;  %v78_v20 = vsel %vm52_vm1, %v51_v18, 0.0  ;;  %s222_s1 = smov [#allocation7]  }
  0x29   :  { %v82_v21 = vmul.f32 %v51_v18, %v49_v2  ;;  %vm96_vm2 = vcmask 7168   ;;  %s119_s6 = sshll.u32 %s222_s1, 4  ;;  %s120_s6 = int_to_ptr.vmem [resolvable:$true] %s119_s6 }
  0x2a   :  { %v83_v8 = vsel %vm52_vm1, %v81_v7, 0.0  ;;  %s189_s8 = scalar_lea.vmem %s120_s6, 16  ;;  %s193_s9 = scalar_lea.vmem %s120_s6, 32 }
  0x2b   :  { %v86_v22 = vsel %vm52_vm1, %v82_v21, 0.0  ;;  %p190_p2 = scmp.ne.s32.totalorder %s120_s6, %s189_s8  ;;  %p194_p3 = scmp.lt.s32.totalorder %s120_s6, %s120_s6 }
  0x2c   :  { %57 = vmax.xlane.f32.xlu0 %v56_v4  ;;  %p195_p4 = scmp.lt.s32.totalorder %s193_s9, %s189_s8 }
  0x2e   :  { %v95_v49 = vld [vmem:[#allocation7] sm:$0x1]  ;;  %p196_p5 = por %p195_p4, %p194_p3 }
  0x30   :  { %76 = vadd.xlane.f32.xlu0 %v75_v6  ;;  %p197_p6 = pnand %p196_p5, %p190_p2 }
  0x34   :  { %84 = vadd.xlane.f32.xlu0 %v83_v8 }
  0xb5   :  { %v55_v9 = vpop.xlane.xlu0 %54 }
  0xb6   :  { %v59_v10 = vsub.f32 %v48_v1, %v55_v9 }
  0xb8   :  { %v61_v11 = vmul.f32 1.442695, %v59_v10 }
  0xb9   :  { %v58_v12 = vpop.xlane.xlu0 %57 }
  0xba   :  { %137 = vpow2.f32 %v61_v11  ;;  %v60_v13 = vsub.f32 %v49_v2, %v58_v12 }
  0xbc   :  { %v63_v14 = vmul.f32 1.442695, %v60_v13 }
  0xbd   :  { %v77_v26 = vpop.xlane.xlu0 %76 }
  0xbe   :  { %139 = vpow2.f32 %v63_v14 }
  0xc1   :  { %v85_v33 = vpop.xlane.xlu0 %84 }
  0xc4   :  { %v138_v15 = vpop.eup %137 }
  0xc5   :  { %v65_v16 = vsel %vm52_vm1, %v138_v15, 0.0 }
  0xc6   :  { %66 = vadd.xlane.f32.xlu1 %v65_v16 }
  0xc8   :  { %v140_v17 = vpop.eup %139 }
  0xc9   :  { %v68_v19 = vsel %vm52_vm1, %v140_v17, 0.0 }
  0xca   :  { %69 = vadd.xlane.f32.xlu1 %v68_v19 }
  0xce   :  { %79 = vadd.xlane.f32.xlu1 %v78_v20 }
  0xd2   :  { %87 = vadd.xlane.f32.xlu1 %v86_v22 }
 0x153   :  { %v67_v23 = vpop.xlane.xlu1 %66 }
 0x154   :  { %141 = vlog2.f32 %v67_v23 }
 0x157   :  { %v70_v24 = vpop.xlane.xlu1 %69 }
 0x158   :  { %143 = vlog2.f32 %v70_v24 }
 0x15b   :  { %v80_v28 = vpop.xlane.xlu1 %79 }
 0x15e   :  { %v142_v25 = vpop.eup %141 }
 0x15f   :  { %v72_v27 = vmul.f32 0.6931472, %v142_v25  ;;  %v88_v35 = vpop.xlane.xlu1 %87 }
 0x161   :  { %v89_v29 = vadd.f32 %v72_v27, %v55_v9 }
 0x162   :  { %v144_v30 = vpop.eup %143 }
 0x163   :  { %v74_v31 = vmul.f32 0.6931472, %v144_v30  ;;  %v91_v32 = vmul.f32 %v89_v29, %v77_v26 }
 0x165   :  { %v90_v34 = vadd.f32 %v74_v31, %v58_v12  ;;  %v93_v37 = vsub.f32 %v91_v32, %v85_v33 }
 0x167   :  { %v92_v36 = vmul.f32 %v90_v34, %v80_v28  ;;  %v97_v39 = vsel %vm96_vm2, %v93_v37, 0.0 }
 0x169   :  { %v94_v38 = vsub.f32 %v92_v36, %v88_v35 }
 0x16b   :  { %v98_v40 = vsel %vm96_vm2, %v94_v38, 0.0 }
 0x16c   :  { %v99_v41 = vadd.f32 %v98_v40, %v97_v39 }
 0x16e   :  { %100 = vadd.xlane.f32.xlu0 %v99_v41 }
 0x1fb   :  { %v101_v42 = vpop.xlane.xlu0 %100 }
 0x1fc   :  { %v102_v43 = vrot.slane %v101_v42, 4 }
 0x1fe   :  { %v103_v44 = vadd.f32 %v102_v43, %v101_v42 }
 0x200   :  { %v104_v45 = vrot.slane %v103_v44, 2 }
 0x202   :  { %v105_v46 = vadd.f32 %v104_v45, %v103_v44 }
 0x204   :  { %v106_v47 = vrot.slane %v105_v46, 1 }
 0x206   :  { %v107_v48 = vadd.f32 %v106_v47, %v105_v46 }
 0x208   :  { %129 = vpush %v107_v48 }
 0x239   :  { %s130_s7 = spop %129 }
 0x23a   :  { %v109_v50 = vstv %s130_s7 }
 0x23b   :  { %v110_v51 = vadd.f32 %v109_v50, %v95_v49 }
 0x23d   :  { %112 = vst.msk [vmem:[#allocation7] sm:$0x1] %vm46_vm0, %v110_v51 }
 0x23e   :  { %200 = shalt.err (!%p197_p6)
}
 0x23f   :  { %s201_s12 = scalar_lea.hbm %s286_s2, 16 }
 0x240   :  { %p202_p7 = scmp.ne.s32.totalorder %s286_s2, %s201_s12  ;;  %p205_p8 = scmp.lt.u32.totalorder %s201_s12, %s286_s2 }
 0x242   :  { %p207_p9 = pnand %p205_p8, %p202_p7 }
 0x244   :  { %210 = shalt.err (!%p207_p9)
}
 0x245   :  { %122 = dma.vmem_to_hbm [thread:$0]  %s120_s6, 16, %s286_s2, [#allocation4]  }
 0x246   :  { %215 = dma.done.wait [#allocation4], 16  }
 0x247   :  { %216 = vsyncadd [#allocation4], 4294967280 }
 0x248   :  { %126 = vsyncpa [#allocation3], 1 }
 0x249   :  { %127 = vsyncpa [#allocation6], 1 }
 0x24a   :  { %128 = vsyncpa [#allocation4], 1 }

</bundles_post_ra>
